<compile_context>
chip_gen: v7x
topology: tpu7x:2x2x1
jax: 0.10.0
libtpu: 0.0.40
codegen_flags: <defaults>
</compile_context>

<pallas_src>
import functools

import jax
import jax.numpy as jnp
import numpy as np
from jax import lax
from jax.experimental import pallas as pl
from jax.experimental.pallas import tpu as pltpu

EPS = 1e-5
_FF_TARGET_CHUNK = 1024     # FFN intermediate-dim tile target (bounds v7x VMEM)
_NEG_INF = -1e30


# --------------------------------------------------------------------------
# Small helpers
# --------------------------------------------------------------------------
def _round_up(x, m):
    return (x + m - 1) // m * m


def _nbytes(a):
    return int(a.size) * a.dtype.itemsize


def _ln(x, g, b):
    mu = jnp.mean(x, axis=-1, keepdims=True)
    var = jnp.mean(jnp.square(x - mu), axis=-1, keepdims=True)
    return (x - mu) * lax.rsqrt(var + EPS) * g + b


def _pick_ff_chunk(ff, target=_FF_TARGET_CHUNK):
    """Largest layout-friendly divisor of ff (multiple of 128) that is <= target."""
    if ff <= target:
        return ff
    candidates = [d for d in range(128, target + 1, 128) if ff % d == 0]
    return max(candidates) if candidates else ff


def _compiler_params(semantics, *, step_bytes):
    # true per-step footprint (double-buffered) + headroom, capped so it is valid
    # on every generation including v7x's 64 MiB physical VMEM.
    vmem = int(min(48 * 2**20, max(32 * 2**20, 2 * step_bytes + 8 * 2**20)))
    return pltpu.CompilerParams(dimension_semantics=semantics,
                                vmem_limit_bytes=vmem)


# --------------------------------------------------------------------------
# Pallas kernels
# --------------------------------------------------------------------------
def _embed_preln_kernel(patches_ref, w_ref, base_ref, g_ref, b_ref, o_ref):
    """Fused: (patch conv + alpha conv) matmul + CLS/pos add + pre_layrnorm.

    patches_ref : (1, S_pad, 4*P*P) bf16  -- row 0 (CLS) and pad rows are zero
    w_ref       : (4*P*P, D)        bf16  -- [w_img ; w_alpha]
    base_ref    : (S_pad, D)        f32   -- row 0: class_emb+pos[0]; rows 1..N: pos[1:]
    """
    x = jnp.dot(patches_ref[0], w_ref[...],
                preferred_element_type=jnp.float32) + base_ref[...]
    o_ref[0] = _ln(x, g_ref[...], b_ref[...])


def _layer_kernel(x_ref, bias_ref, ln1_g, ln1_b, wq, bq, wk, bk, wv, bv, wo, bo,
                  ln2_g, ln2_b, w1, b1, w2, b2, o_ref, h_sc, *, nh):
    """One fused CLIP encoder layer for one batch element.

    Trailing grid axis t (\"arbitrary\"):
      t in [0, nh)        : attention head t  (QK^T, softmax, PV, +=out-proj)
      t in [nh, nh+n_ff)  : FFN intermediate-dim chunk t-nh (+= w2 contribution)
    The output block stays VMEM-resident across the whole axis and is the
    accumulator; h_sc holds LN1(x) during attention and LN2(x+attn) during FFN.
    """
    t = pl.program_id(1)

    @pl.when(t == 0)
    def _():
        x = x_ref[0]
        h_sc[...] = _ln(x, ln1_g[...], ln1_b[...]).astype(jnp.bfloat16)
        o_ref[0] = x + bo[...]                       # residual + out-proj bias

    @pl.when(t < nh)
    def _():                                         # ---- attention head step ----
        h = h_sc[...]                                # (Sp, D) bf16
        q = (jnp.dot(h, wq[0], preferred_element_type=jnp.float32)
             + bq[0]).astype(jnp.bfloat16)           # scale folded into wq/bq
        k = (jnp.dot(h, wk[0], preferred_element_type=jnp.float32)
             + bk[0]).astype(jnp.bfloat16)
        v = (jnp.dot(h, wv[0], preferred_element_type=jnp.float32)
             + bv[0]).astype(jnp.bfloat16)           # (Sp, hd)

        scores = lax.dot_general(q, k, (((1,), (1,)), ((), ())),
                                 preferred_element_type=jnp.float32)  # (Sp, Sp)
        scores = scores + bias_ref[...]              # additive pad-key mask row
        scores = scores - jnp.max(scores, axis=-1, keepdims=True)
        p = jnp.exp(scores)
        p = p * pl.reciprocal(jnp.sum(p, axis=-1, keepdims=True), approx=True)

        pv = jnp.dot(p.astype(jnp.bfloat16), v,
                     preferred_element_type=jnp.float32)              # (Sp, hd)
        o_ref[0] += jnp.dot(pv.astype(jnp.bfloat16), wo[0],
                            preferred_element_type=jnp.float32)       # (Sp, D)

    @pl.when(t == nh)
    def _():                                         # ---- FFN prologue ----
        x1 = o_ref[0]                                # x + attn (fully accumulated)
        h_sc[...] = _ln(x1, ln2_g[...], ln2_b[...]).astype(jnp.bfloat16)
        o_ref[0] = x1 + b2[...]

    @pl.when(t >= nh)
    def _():                                         # ---- FFN chunk step ----
        h1 = jnp.dot(h_sc[...], w1[...],
                     preferred_element_type=jnp.float32) + b1[...]
        h1 = h1 * jax.nn.sigmoid(1.702 * h1)         # quick_gelu
        o_ref[0] += jnp.dot(h1.astype(jnp.bfloat16), w2[...],
                            preferred_element_type=jnp.float32)


# --------------------------------------------------------------------------
# pallas_call wrappers
# --------------------------------------------------------------------------
def _embed_pre_ln(patches, kp):
    b, s_pad, kdim = patches.shape
    d = kp["w_patch"].shape[1]

    def const(shape):
        return pl.BlockSpec(shape, lambda bb: tuple(0 for _ in shape))

    operands = (patches, kp["w_patch"], kp["base"], kp["pre_ln_g"], kp["pre_ln_b"])
    flops = 2 * b * s_pad * kdim * d
    bytes_accessed = sum(_nbytes(a) for a in operands) + b * s_pad * d * 4
    step_bytes = (s_pad * kdim * 2 + kdim * d * 2 + s_pad * d * 4   # in blocks
                  + s_pad * d * 4)                                  # out block
    return pl.pallas_call(
        _embed_preln_kernel,
        grid=(b,),
        in_specs=[
            pl.BlockSpec((1, s_pad, kdim), lambda bb: (bb, 0, 0)),
            const((kdim, d)),
            const((s_pad, d)),
            const((1, d)),
            const((1, d)),
        ],
        out_specs=pl.BlockSpec((1, s_pad, d), lambda bb: (bb, 0, 0)),
        out_shape=jax.ShapeDtypeStruct((b, s_pad, d), jnp.float32),
        compiler_params=_compiler_params(("parallel",), step_bytes=step_bytes),
        cost_estimate=pl.CostEstimate(flops=int(flops), transcendentals=0,
                                      bytes_accessed=int(bytes_accessed)),
    )(*operands)


def _encoder_layer(x, key_bias, lp, *, nh):
    b, s_pad, d = x.shape
    hd = lp["wq"].shape[2]
    ff = lp["w1"].shape[1]
    ff_chunk = _pick_ff_chunk(ff)
    n_chunks = ff // ff_chunk
    n_t = nh + n_chunks                       # trailing axis: heads then FF chunks

    def const(shape):
        return pl.BlockSpec(shape, lambda bb, tt: tuple(0 for _ in shape))

    def head_idx(tt):                         # clamp so FFN steps re-use head nh-1
        return jnp.minimum(tt, nh - 1)

    def chunk_idx(tt):                        # clamp so attention steps re-use 0
        return jnp.maximum(tt - nh, 0)

    in_specs = [
        pl.BlockSpec((1, s_pad, d), lambda bb, tt: (bb, 0, 0)),            # x
        const((1, s_pad)),                                                  # key bias
        const((1, d)), const((1, d)),                                       # ln1 g/b
        pl.BlockSpec((1, d, hd), lambda bb, tt: (head_idx(tt), 0, 0)),      # wq
        pl.BlockSpec((1, 1, hd), lambda bb, tt: (head_idx(tt), 0, 0)),      # bq
        pl.BlockSpec((1, d, hd), lambda bb, tt: (head_idx(tt), 0, 0)),      # wk
        pl.BlockSpec((1, 1, hd), lambda bb, tt: (head_idx(tt), 0, 0)),      # bk
        pl.BlockSpec((1, d, hd), lambda bb, tt: (head_idx(tt), 0, 0)),      # wv
        pl.BlockSpec((1, 1, hd), lambda bb, tt: (head_idx(tt), 0, 0)),      # bv
        pl.BlockSpec((1, hd, d), lambda bb, tt: (head_idx(tt), 0, 0)),      # wo
        const((1, d)),                                                      # bo
        const((1, d)), const((1, d)),                                       # ln2 g/b
        pl.BlockSpec((d, ff_chunk), lambda bb, tt: (0, chunk_idx(tt))),     # w1
        pl.BlockSpec((1, ff_chunk), lambda bb, tt: (0, chunk_idx(tt))),     # b1
        pl.BlockSpec((ff_chunk, d), lambda bb, tt: (chunk_idx(tt), 0)),     # w2
        const((1, d)),                                                      # b2
    ]
    operands = (x, key_bias, lp["ln1_g"], lp["ln1_b"],
                lp["wq"], lp["bq"], lp["wk"], lp["bk"], lp["wv"], lp["bv"],
                lp["wo"], lp["bo"], lp["ln2_g"], lp["ln2_b"],
                lp["w1"], lp["b1"], lp["w2"], lp["b2"])

    flops = b * (8 * s_pad * d * d + 4 * nh * s_pad * s_pad * hd
                 + 4 * s_pad * d * ff)
    bytes_accessed = sum(_nbytes(a) for a in operands) + _nbytes(x)
    # per-step resident footprint: x + out blocks, scratch, softmax intermediates,
    # one head's weights and one FFN chunk's weights
    step_bytes = (2 * s_pad * d * 4
                  + s_pad * d * 2
                  + 3 * s_pad * s_pad * 4
                  + 4 * d * hd * 2
                  + 2 * d * ff_chunk * 2)
    kern = functools.partial(_layer_kernel, nh=nh)
    return pl.pallas_call(
        kern,
        grid=(b, n_t),
        in_specs=in_specs,
        out_specs=pl.BlockSpec((1, s_pad, d), lambda bb, tt: (bb, 0, 0)),
        out_shape=jax.ShapeDtypeStruct((b, s_pad, d), jnp.float32),
        scratch_shapes=[pltpu.VMEM((s_pad, d), jnp.bfloat16)],
        compiler_params=_compiler_params(("parallel", "arbitrary"),
                                         step_bytes=step_bytes),
        cost_estimate=pl.CostEstimate(
            flops=int(flops),
            transcendentals=int(b * (nh * s_pad * s_pad + s_pad * ff)),
            bytes_accessed=int(bytes_accessed)),
    )(*operands)


# --------------------------------------------------------------------------
# Host-side glue
# --------------------------------------------------------------------------
def _extract_patches(x, patch):
    """NCHW -> (B, num_patches, C*P*P), channel-major within a patch
    (matches torch Conv2d weight.reshape(out, -1) contraction order)."""
    b, c, h, w = x.shape
    gh, gw = h // patch, w // patch
    x = x.reshape(b, c, gh, patch, gw, patch)
    x = x.transpose(0, 2, 4, 1, 3, 5)          # (B, gh, gw, C, P, P)
    return x.reshape(b, gh * gw, c * patch * patch)


def prepare_tower_params(params, *, num_heads):
    """One-time conversion of module parameters into kernel layouts:
    bf16 matmul weights, head-split QKV/out-proj, attention scale folded in,
    fused [w_img ; w_alpha] patch weight, (S_pad, D) CLS+pos 'base' slab and
    a precomputed additive pad-key mask row."""
    d = params["class_embedding"].shape[0]
    hd = d // num_heads
    scale = hd ** -0.5
    pos = params["pos_embedding"]                       # (N+1, D)
    s = pos.shape[0]
    s_pad = _round_up(s, 8)                             # sublane-aligned sequence

    base = jnp.concatenate(
        [params["class_embedding"][None, :] + pos[0:1],
         pos[1:],
         jnp.zeros((s_pad - s, d), jnp.float32)], axis=0)        # (S_pad, D)

    key_bias = jnp.where(jnp.arange(s_pad) < s, 0.0, _NEG_INF)
    key_bias = key_bias.astype(jnp.float32)[None, :]             # (1, S_pad)

    kp = {
        "w_patch": jnp.concatenate([params["w_img_t"], params["w_alpha_t"]],
                                   axis=0).astype(jnp.bfloat16),  # (4*P*P, D)
        "base": base,
        "key_bias": key_bias,
        "pre_ln_g": params["pre_ln_g"][None, :],
        "pre_ln_b": params["pre_ln_b"][None, :],
        "num_heads": num_heads,
        "s_valid": s,
        "layers": [],
    }

    def split_heads_in(w_t):          # (D_in, D_out) -> (H, D_in, hd)
        return jnp.transpose(w_t.reshape(w_t.shape[0], num_heads, hd), (1, 0, 2))

    for lp in params["layers"]:
        kp["layers"].append({
            "ln1_g": lp["ln1_g"], "ln1_b": lp["ln1_b"],
            "wq": (split_heads_in(lp["wq_t"]) * scale).astype(jnp.bfloat16),
            "bq": lp["bq"].reshape(num_heads, 1, hd) * scale,
            "wk": split_heads_in(lp["wk_t"]).astype(jnp.bfloat16),
            "bk": lp["bk"].reshape(num_heads, 1, hd),
            "wv": split_heads_in(lp["wv_t"]).astype(jnp.bfloat16),
            "bv": lp["bv"].reshape(num_heads, 1, hd),
            "wo": lp["wo_t"].reshape(num_heads, hd, d).astype(jnp.bfloat16),
            "bo": lp["bo"],
            "ln2_g": lp["ln2_g"], "ln2_b": lp["ln2_b"],
            "w1": lp["w1_t"].astype(jnp.bfloat16), "b1": lp["b1"],
            "w2": lp["w2_t"].astype(jnp.bfloat16), "b2": lp["b2"],
        })
    return kp


def alpha_clip_vision_tower_forward(kparams, images, alphas, *, patch,
                                    select_layer=-2):
    img_patches = _extract_patches(images, patch)       # (B, N, 3*P*P)
    alpha_patches = _extract_patches(alphas, patch)     # (B, N, P*P)
    # fuse the two convs into a single matmul against [w_img ; w_alpha]
    patches = jnp.concatenate([img_patches, alpha_patches], axis=-1)
    n = patches.shape[1]
    s = n + 1
    s_pad = kparams["base"].shape[0]
    # patch rows occupy sequence slots 1..N; CLS (row 0) and pad rows contribute 0
    patches = jnp.pad(patches, ((0, 0), (1, s_pad - s), (0, 0))).astype(jnp.bfloat16)

    x = _embed_pre_ln(patches, kparams)                 # (B, S_pad, D) f32

    layers = kparams["layers"]
    n_layers = len(layers)
    # hidden_states = [embeddings, layer1, ..., layerL]; with select_layer=-2 the
    # final layer's output is never used, so only run the layers that matter.
    n_run = (n_layers + 1 + select_layer) if select_layer < 0 else select_layer
    n_run = max(0, min(n_run, n_layers))
    for lp in layers[:n_run]:
        x = _encoder_layer(x, kparams["key_bias"], lp, nh=kparams["num_heads"])

    return x[:, 1:s]                                    # 'patch': drop CLS (and pad)


# --------------------------------------------------------------------------
# Deterministic parameter init (synthetic weights; shapes follow the module)
# --------------------------------------------------------------------------
def init_params(key, *, c_img, patch, d_model, d_ff, n_layers, num_patches):
    ks = jax.random.split(key, 8 + n_layers)

    def nrm(k, shape):
        return 0.02 * jax.random.normal(k, shape, jnp.float32)

    w_img = nrm(ks[0], (d_model, c_img, patch, patch))   # Conv2d(3, D, P, stride=P)
    w_alpha = nrm(ks[1], (d_model, 1, patch, patch))     # Conv2d(1, D, P, stride=P)

    params = {
        "w_img_t": w_img.reshape(d_model, -1).T,         # (3*P*P, D)
        "w_alpha_t": w_alpha.reshape(d_model, -1).T,     # (P*P, D)
        "class_embedding": nrm(ks[2], (d_model,)),
        "pos_embedding": nrm(ks[3], (num_patches + 1, d_model)),
        "pre_ln_g": jnp.ones((d_model,), jnp.float32),
        "pre_ln_b": jnp.zeros((d_model,), jnp.float32),
        "layers": [],
    }
    for li in range(n_layers):
        lk = jax.random.split(ks[8 + li], 8)
        params["layers"].append({
            "ln1_g": jnp.ones((1, d_model)), "ln1_b": jnp.zeros((1, d_model)),
            "wq_t": nrm(lk[0], (d_model, d_model)).T, "bq": nrm(lk[1], (1, d_model)),
            "wk_t": nrm(lk[2], (d_model, d_model)).T, "bk": jnp.zeros((1, d_model)),
            "wv_t": nrm(lk[3], (d_model, d_model)).T, "bv": jnp.zeros((1, d_model)),
            "wo_t": nrm(lk[4], (d_model, d_model)).T, "bo": jnp.zeros((1, d_model)),
            "ln2_g": jnp.ones((1, d_model)), "ln2_b": jnp.zeros((1, d_model)),
            "w1_t": nrm(lk[5], (d_ff, d_model)).T, "b1": jnp.zeros((1, d_ff)),
            "w2_t": nrm(lk[6], (d_model, d_ff)).T, "b2": jnp.zeros((1, d_model)),
        })
    return params


# --------------------------------------------------------------------------
# Pure-JAX f32 reference (same math) for correctness check
# --------------------------------------------------------------------------
def _reference_forward(params, images, alphas, *, patch, num_heads, select_layer=-2):
    b = images.shape[0]
    d = params["class_embedding"].shape[0]
    imgp = _extract_patches(images, patch)
    alphap = _extract_patches(alphas, patch)
    pe = imgp @ params["w_img_t"] + alphap @ params["w_alpha_t"]
    cls = jnp.broadcast_to(params["class_embedding"][None, None, :], (b, 1, d))
    x = jnp.concatenate([cls, pe], axis=1) + params["pos_embedding"][None]

    def ln(t, g, b_):
        mu = t.mean(-1, keepdims=True)
        var = ((t - mu) ** 2).mean(-1, keepdims=True)
        return (t - mu) * jax.lax.rsqrt(var + EPS) * g + b_

    x = ln(x, params["pre_ln_g"], params["pre_ln_b"])
    hs = [x]
    hd = d // num_heads
    for lp in params["layers"]:
        h = ln(x, lp["ln1_g"][0], lp["ln1_b"][0])
        q = (h @ lp["wq_t"] + lp["bq"][0]) * (hd ** -0.5)
        k = h @ lp["wk_t"] + lp["bk"][0]
        v = h @ lp["wv_t"] + lp["bv"][0]
        s_len = x.shape[1]
        qh = q.reshape(b, s_len, num_heads, hd).transpose(0, 2, 1, 3)
        kh = k.reshape(b, s_len, num_heads, hd).transpose(0, 2, 1, 3)
        vh = v.reshape(b, s_len, num_heads, hd).transpose(0, 2, 1, 3)
        sc = jnp.einsum("bhqd,bhkd->bhqk", qh, kh)
        p = jax.nn.softmax(sc, axis=-1)
        a = jnp.einsum("bhqk,bhkd->bhqd", p, vh).transpose(0, 2, 1, 3).reshape(b, s_len, d)
        x = x + a @ lp["wo_t"] + lp["bo"][0]
        h = ln(x, lp["ln2_g"][0], lp["ln2_b"][0])
        h1 = h @ lp["w1_t"] + lp["b1"][0]
        h1 = h1 * jax.nn.sigmoid(1.702 * h1)
        x = x + h1 @ lp["w2_t"] + lp["b2"][0]
        hs.append(x)
    return hs[select_layer][:, 1:]


# --------------------------------------------------------------------------
if __name__ == "__main__":
    # Small synthetic CLIP-vision config
    B, C, H, W = 2, 3, 16, 16
    PATCH, D, NH, FF, LAYERS = 8, 32, 4, 64, 3
    N_PATCHES = (H // PATCH) * (W // PATCH)

    key = jax.random.PRNGKey(0)
    k_p, k_img, k_alpha = jax.random.split(key, 3)

    params = init_params(k_p, c_img=C, patch=PATCH, d_model=D, d_ff=FF,
                         n_layers=LAYERS, num_patches=N_PATCHES)
    kparams = prepare_tower_params(params, num_heads=NH)

    images = jax.random.normal(k_img, (B, C, H, W), jnp.float32)
    alphas = jax.random.normal(k_alpha, (B, 1, H, W), jnp.float32)

    feats = alpha_clip_vision_tower_forward(kparams, images, alphas, patch=PATCH)
    feats = jax.block_until_ready(feats)
    assert feats.shape == (B, N_PATCHES, D), feats.shape

    ref = jax.block_until_ready(
        _reference_forward(params, images, alphas, patch=PATCH, num_heads=NH)
    )
    # bf16 MXU matmuls + approx softmax reciprocal compared against an f32 reference
    np.testing.assert_allclose(np.asarray(feats), np.asarray(ref),
                               rtol=5e-2, atol=5e-2)

    print("KERNEL_OK")
</pallas_src>

<mosaic_0001>
module attributes {stable_mosaic.version = 11 : i64} {
  func.func @_embed_preln_kernel(%arg0: i32, %arg1: memref<1x8x256xbf16, #tpu.memory_space<vmem>>, %arg2: memref<256x32xbf16, #tpu.memory_space<vmem>>, %arg3: memref<8x32xf32, #tpu.memory_space<vmem>>, %arg4: memref<1x32xf32, #tpu.memory_space<vmem>>, %arg5: memref<1x32xf32, #tpu.memory_space<vmem>>, %arg6: memref<1x8x32xf32, #tpu.memory_space<vmem>>) attributes {dimension_semantics = [#tpu.dimension_semantics<parallel>], iteration_bounds = array<i64: 2>, scalar_prefetch = 0 : i64, scratch_operands = 0 : i64, tpu.core_type = #tpu.core_type<tc>, window_params = [{transform_indices = @transform_0, window_bounds = array<i64: 1, 8, 256>}, {pipeline_mode = #tpu.pipeline_mode<synchronous>, transform_indices = @transform_1, window_bounds = array<i64: 256, 32>}, {pipeline_mode = #tpu.pipeline_mode<synchronous>, transform_indices = @transform_2, window_bounds = array<i64: 8, 32>}, {pipeline_mode = #tpu.pipeline_mode<synchronous>, transform_indices = @transform_3, window_bounds = array<i64: 1, 32>}, {pipeline_mode = #tpu.pipeline_mode<synchronous>, transform_indices = @transform_4, window_bounds = array<i64: 1, 32>}, {transform_indices = @transform_5, window_bounds = array<i64: 1, 8, 32>}]} {
    %c0 = arith.constant 0 : index
    %c0_0 = arith.constant 0 : index
    %c0_1 = arith.constant 0 : index
    %0 = vector.load %arg1[%c0, %c0_0, %c0_1] : memref<1x8x256xbf16, #tpu.memory_space<vmem>>, vector<1x8x256xbf16>
    %1 = vector.shape_cast %0 : vector<1x8x256xbf16> to vector<8x256xbf16>
    %c0_2 = arith.constant 0 : index
    %c0_3 = arith.constant 0 : index
    %2 = vector.load %arg2[%c0_2, %c0_3] : memref<256x32xbf16, #tpu.memory_space<vmem>>, vector<256x32xbf16>
    %cst = arith.constant dense<0.000000e+00> : vector<8x32xf32>
    %3 = tpu.matmul %1, %2, %cst {dimension_numbers = #tpu.dot_dimension_numbers<[1], [0], [0], [1], [0, 0, 1, 1], [], []>} : vector<8x256xbf16>, vector<256x32xbf16>, vector<8x32xf32> -> vector<8x32xf32>
    %c0_4 = arith.constant 0 : index
    %c0_5 = arith.constant 0 : index
    %4 = vector.load %arg3[%c0_4, %c0_5] : memref<8x32xf32, #tpu.memory_space<vmem>>, vector<8x32xf32>
    %5 = arith.addf %3, %4 : vector<8x32xf32>
    %c0_6 = arith.constant 0 : index
    %c0_7 = arith.constant 0 : index
    %6 = vector.load %arg4[%c0_6, %c0_7] : memref<1x32xf32, #tpu.memory_space<vmem>>, vector<1x32xf32>
    %c0_8 = arith.constant 0 : index
    %c0_9 = arith.constant 0 : index
    %7 = vector.load %arg5[%c0_8, %c0_9] : memref<1x32xf32, #tpu.memory_space<vmem>>, vector<1x32xf32>
    %cst_10 = arith.constant dense<0.000000e+00> : vector<8xf32>
    %8 = vector.multi_reduction <add>, %5, %cst_10 [1] : vector<8x32xf32> to vector<8xf32>
    %9 = vector.shape_cast %8 : vector<8xf32> to vector<8x1xf32>
    %cst_11 = arith.constant 3.200000e+01 : f32
    %10 = vector.broadcast %cst_11 : f32 to vector<8x1xf32>
    %11 = arith.divf %9, %10 : vector<8x1xf32>
    %12 = vector.broadcast %11 : vector<8x1xf32> to vector<8x32xf32>
    %13 = arith.subf %5, %12 : vector<8x32xf32>
    %14 = arith.mulf %13, %13 : vector<8x32xf32>
    %cst_12 = arith.constant dense<0.000000e+00> : vector<8xf32>
    %15 = vector.multi_reduction <add>, %14, %cst_12 [1] : vector<8x32xf32> to vector<8xf32>
    %16 = vector.shape_cast %15 : vector<8xf32> to vector<8x1xf32>
    %cst_13 = arith.constant 3.200000e+01 : f32
    %17 = vector.broadcast %cst_13 : f32 to vector<8x1xf32>
    %18 = arith.divf %16, %17 : vector<8x1xf32>
    %19 = vector.broadcast %11 : vector<8x1xf32> to vector<8x32xf32>
    %20 = arith.subf %5, %19 : vector<8x32xf32>
    %cst_14 = arith.constant 9.99999974E-6 : f32
    %21 = vector.broadcast %cst_14 : f32 to vector<8x1xf32>
    %22 = arith.addf %18, %21 : vector<8x1xf32>
    %23 = math.rsqrt %22 : vector<8x1xf32>
    %24 = vector.broadcast %23 : vector<8x1xf32> to vector<8x32xf32>
    %25 = arith.mulf %20, %24 : vector<8x32xf32>
    %26 = vector.broadcast %6 : vector<1x32xf32> to vector<8x32xf32>
    %27 = arith.mulf %25, %26 : vector<8x32xf32>
    %28 = vector.broadcast %7 : vector<1x32xf32> to vector<8x32xf32>
    %29 = arith.addf %27, %28 : vector<8x32xf32>
    %c0_15 = arith.constant 0 : index
    %c0_16 = arith.constant 0 : index
    %c0_17 = arith.constant 0 : index
    %30 = vector.load %arg6[%c0_15, %c0_16, %c0_17] : memref<1x8x32xf32, #tpu.memory_space<vmem>>, vector<1x8x32xf32>
    %31 = vector.shape_cast %30 : vector<1x8x32xf32> to vector<8x32xf32>
    %32 = vector.shape_cast %29 : vector<8x32xf32> to vector<1x8x32xf32>
    tpu.vector_store %arg6[%c0_15, %c0_16, %c0_17], %32 {strides = array<i32>} : memref<1x8x32xf32, #tpu.memory_space<vmem>>, vector<1x8x32xf32>,
    return
  }
  func.func @transform_0(%arg0: i32) -> (i32, i32, i32) {
    %c0_i32 = arith.constant 0 : i32
    %c0_i32_0 = arith.constant 0 : i32
    %c0_i32_1 = arith.constant 0 : i32
    return %arg0, %c0_i32, %c0_i32_0 : i32, i32, i32
  }
  func.func @transform_1(%arg0: i32) -> (i32, i32) {
    %c0_i32 = arith.constant 0 : i32
    %c0_i32_0 = arith.constant 0 : i32
    %c0_i32_1 = arith.constant 0 : i32
    return %c0_i32, %c0_i32_0 : i32, i32
  }
  func.func @transform_2(%arg0: i32) -> (i32, i32) {
    %c0_i32 = arith.constant 0 : i32
    %c0_i32_0 = arith.constant 0 : i32
    %c0_i32_1 = arith.constant 0 : i32
    return %c0_i32, %c0_i32_0 : i32, i32
  }
  func.func @transform_3(%arg0: i32) -> (i32, i32) {
    %c0_i32 = arith.constant 0 : i32
    %c0_i32_0 = arith.constant 0 : i32
    %c0_i32_1 = arith.constant 0 : i32
    return %c0_i32, %c0_i32_0 : i32, i32
  }
  func.func @transform_4(%arg0: i32) -> (i32, i32) {
    %c0_i32 = arith.constant 0 : i32
    %c0_i32_0 = arith.constant 0 : i32
    %c0_i32_1 = arith.constant 0 : i32
    return %c0_i32, %c0_i32_0 : i32, i32
  }
  func.func @transform_5(%arg0: i32) -> (i32, i32, i32) {
    %c0_i32 = arith.constant 0 : i32
    %c0_i32_0 = arith.constant 0 : i32
    %c0_i32_1 = arith.constant 0 : i32
    return %arg0, %c0_i32, %c0_i32_0 : i32, i32, i32
  }
}

</mosaic_0001>

<bundles_post_ra>
// kernel: tpu_custom_call.1
= control target key start
LH: loop header
LB: loop body
LE: loop exit
PB: predicated region body
PF: predicated region fallthrough
CT: control target
= control target key end

     0   :  { %10 = vsyncpa [#allocation3], 0  ;;  %s874_s0 = inlined_call_operand.vmem [shape: bf16[2,8,256], index: 0, kind: input, shape index: {}]   ;;  %s875_s1 = inlined_call_operand.vmem [shape: bf16[256,32], index: 1, kind: input, shape index: {}]   ;;  %s876_s2 = inlined_call_operand.vmem [shape: f32[8,32], index: 2, kind: input, shape index: {}]   ;;  %s877_s3 = inlined_call_operand.vmem [shape: f32[1,32], index: 3, kind: input, shape index: {}]   ;;  %s878_s4 = inlined_call_operand.vmem [shape: f32[1,32], index: 4, kind: input, shape index: {}]   ;;  %s879_s5 = inlined_call_operand.hbm [shape: f32[2,8,32], index: 5, kind: output, shape index: {}]  }
   0x1   :  { %12 = vsyncpa [#allocation3 + $0x1], 0  ;;  %s714_s18 = smov 0   ;;  %s716_s19 = smov 0  }
   0x2   :  { %s718_s20 = smov 0   ;;  %s720_s21 = smov 0  }
   0x3 LB: > { %s735_s22 = sadd.s32 4294967295, %s681_s21   ;;  %s506_s23 = sadd.s32 4294967294, %s681_s21   ;;  %s681_s21 = sphi %s720_s21, %s885_s21   ;;  %s677_s20 = sphi %s718_s20, %s884_s20   ;;  %s673_s19 = sphi %s716_s19, %s883_s19   ;;  %s669_s18 = sphi %s714_s18, %s882_s18  }
   0x4   : > { %s739_s24 = sadd.s32 1, %s681_s21   ;;  %s135_s25 = sadd.s32 1, %s677_s20 }
   0x5   : > { %s132_s26 = ssub.s32 %s681_s21, %s739_s24  ;;  %p145_p0 = scmp.ne.s32.totalorder %s677_s20, %s673_s19 }
   0x6   : > { %p133_p1 = scmp.eq.s32.totalorder %s132_s26, 0  ;;  %p146_p2 = scmp.eq.s32.totalorder %s735_s22, 1 }
   0x7   : > { %p151_p3 = scmp.ne.s32.totalorder %s673_s19, %s669_s18  ;;  %p152_p4 = scmp.eq.s32.totalorder %s506_s23, 1 }
   0x8   : > { %s750_s27 = scalar_select %p133_p1, %s677_s20, %s135_s25  }
   0x9   : > { %p752_p5 = por %p146_p2, %p145_p0  ;;  %p756_p6 = por %p152_p4, %p151_p3 }
   0xa   : > { %p509_p7 = scmp.ge.s32.totalorder %s681_s21, 1  ;;  %p190_p8 = scmp.lt.s32.totalorder %s681_s21, 3 }
   0xc   : > { %p191_p9 = pnand %p509_p7, %p190_p8 }
   0xd   : > { %v599_v0 = vld [vmem:[%s875_s1 + $0x40] sm:$0xff] (!%p191_p9)   ;;  %v601_v2 = vld [vmem:[%s875_s1 + $0x48] sm:$0xff] (!%p191_p9)   ;;  %p218_p10 = scmp.lt.s32.totalorder (!%p191_p9), %s735_s22, 1  ;;  %v603_v4 = vld [vmem:[%s875_s1 + $0x50] sm:$0xff] (!%p191_p9)   ;;  %vm403_vm0 = vcmask (!%p191_p9), 261120   ;;  %s215_s12 = sand.u32 (!%p191_p9), 1, %s673_s19  }
   0xe   : > { %194 = sbr.rel (%p191_p9) target bundleno = 590 (0x24e), region = 40  ;;  %v600_v1 = vld [vmem:[%s875_s1] sm:$0xff] (!%p191_p9)   ;;  %538 = vmatprep.subr.bf16.mxu0 (!%p191_p9), %v599_v0  ;;  %v602_v3 = vld [vmem:[%s875_s1 + $0x8] sm:$0xff] (!%p191_p9)   ;;  %v604_v5 = vld [vmem:[%s875_s1 + $0x10] sm:$0xff] (!%p191_p9)   ;;  %s510_s13 = sshll.u32 (!%p191_p9), %s215_s12, 3 }
   0xf   : > { %539 = vmatpush3.bf16.msra.mxu0 (!%p191_p9), %v600_v1  ;;  %v605_v6 = vld [vmem:[%s875_s1 + $0x58] sm:$0xff] (!%p191_p9)   ;;  %v607_v8 = vld [vmem:[%s875_s1 + $0x60] sm:$0xff] (!%p191_p9)   ;;  %v609_v10 = vld [vmem:[%s875_s1 + $0x68] sm:$0xff] (!%p191_p9)   ;;  %s534_s23 = sshll.u32 (!%p191_p9), %s735_s22, 7  ;;  %s217_s25 = scalar_lea.vmem (!%p191_p9), [#allocation2], %s510_s13 }
  0x10   : > { %540 = vmatprep.subr.bf16.mxu0 (!%p191_p9), %v601_v2  ;;  %v606_v7 = vld [vmem:[%s875_s1 + $0x18] sm:$0xff] (!%p191_p9)   ;;  %v608_v9 = vld [vmem:[%s875_s1 + $0x20] sm:$0xff] (!%p191_p9)   ;;  %v610_v13 = vld [vmem:[%s875_s1 + $0x28] sm:$0xff] (!%p191_p9)   ;;  %s831_s7 = scalar_lea.hbm (!%p191_p9), %s879_s5, %s534_s23  ;;  %s434_s8 = scalar_lea.sflag (!%p191_p9), [#allocation3], %s215_s12 }
  0x11   : > { %v611_v14 = vld [vmem:[%s875_s1 + $0x70] sm:$0xff] (!%p191_p9)   ;;  %v613_v16 = vld [vmem:[%s875_s1 + $0x78] sm:$0xff] (!%p191_p9)   ;;  %v257_v21 = vld [vmem:[%s876_s2] sm:$0xff] (!%p191_p9) }
  0x12   : > { %v612_v15 = vld [vmem:[%s875_s1 + $0x30] sm:$0xff] (!%p191_p9)   ;;  %v614_v17 = vld [vmem:[%s875_s1 + $0x38] sm:$0xff] (!%p191_p9)   ;;  %v531_v36 = vld [vmem:[%s877_s3] ss:$0 sm:$0xff] (!%p191_p9) }
  0x13   : > { %541 = vmatpush3.bf16.msra.mxu0 (!%p191_p9), %v602_v3  ;;  %v532_v38 = vld [vmem:[%s878_s4] ss:$0 sm:$0xff] (!%p191_p9) }
  0x14   : > { %542 = vmatprep.subr.bf16.mxu0 (!%p191_p9), %v603_v4 }
  0x15   : > { %s219_s15 = scalar_select %p218_p10, %s735_s22, 1 }
  0x16   : > { %s683_s22 = smov [#allocation2]  }
  0x17   : > { %s537_s26 = sshll.u32 %s219_s15, 3  ;;  %543 = vmatpush3.bf16.msra.mxu0 %v604_v5  ;;  %s623_s10 = sshll.u32 %s683_s22, 4  ;;  %s624_s10 = int_to_ptr.vmem [resolvable:$false] %s623_s10 }
  0x18   : > { %544 = vmatprep.subr.bf16.mxu0 %v605_v6  ;;  %s222_s11 = scalar_lea.vmem %s874_s0, %s537_s26  ;;  %s447_s26 = sshll.u32 %s217_s25, 4  ;;  %s833_s26 = int_to_ptr.vmem [resolvable:$true] %s447_s26 }
  0x19   : > { %v224_v11 = vld [vmem:[%s222_s11] sm:$0xff]  ;;  %s619_s9 = scalar_lea.vmem %s833_s26, 128  ;;  %s625_s11 = scalar_lea.vmem %s624_s10, 256 }
  0x1a   : > { %v514_v12 = vcombine.high %v224_v11, %v224_v11  ;;  %v513_v18 = vcombine.low %v224_v11, %v224_v11  ;;  %p620_p11 = scmp.ne.s32.totalorder %s833_s26, %s619_s9  ;;  %p626_p0 = scmp.lt.s32.totalorder %s833_s26, %s624_s10 }
  0x1b   : > { %545 = vmatpush3.bf16.msra.mxu0 %v606_v7  ;;  %p627_p1 = scmp.lt.s32.totalorder %s625_s11, %s619_s9 }
  0x1c   : > { %546 = vmatprep.subr.bf16.mxu0 %v607_v8  ;;  %393 = vmatprep.mubr.bf16.mxu0 %v514_v12  ;;  %p621_p12 = pnand %p620_p11, %p752_p5 }
  0x1d   : > { %p628_p2 = por %p627_p1, %p626_p0 }
  0x1e   : > { %p622_p13 = pneg %p621_p12 }
  0x1f   : > { %547 = vmatpush3.bf16.msra.mxu0 %v608_v9 }
  0x20   : > { %548 = vmatprep.subr.bf16.mxu0 %v609_v10  ;;  %p629_p3 = pnand %p628_p2, %p622_p13 }
  0x23   : > { %549 = vmatpush3.bf16.msra.mxu0 %v610_v13 }
  0x24   : > { %550 = vmatprep.subr.bf16.mxu0 %v611_v14 }
  0x27   : > { %551 = vmatpush3.bf16.msra.mxu0 %v612_v15 }
  0x28   : > { %552 = vmatprep.subr.bf16.mxu0 %v613_v16 }
  0x2b   : > { %553 = vmatpush3.bf16.msra.mxu0 %v614_v17 }
  0x2e   : > { %394 = vmatmul.mubr.bf16.vlgmr.msra.gmra.mrb[0].mxu0 %v513_v18 }
 0x101   : > { %v554_v19 = vpop.f32.mrb[0].mxu0 }
 0x102   : > { %v555_v20 = vpop.f32.mrb[1].mxu0 }
 0x103   : > { %v556_v22 = vadd.f32 %v555_v20, %v554_v19  ;;  %v557_v23 = vpop.f32.mrb[2].mxu0 }
 0x104   : > { %v558_v24 = vpop.f32.mrb[3].mxu0 }
 0x105   : > { %v396_v25 = vadd.f32 %v556_v22, %v257_v21 }
 0x107   : > { %v404_v26 = vsel %vm403_vm0, %v396_v25, 0.0 }
 0x108   : > { %405 = vadd.xlane.f32.xlu0 %v404_v26 }
 0x195   : > { %v406_v27 = vpop.xlane.xlu0 %405 }
 0x196   : > { %v408_v28 = vmul.f32 0.03125, %v406_v27 }
 0x198   : > { %v409_v29 = vsub.f32 %v396_v25, %v408_v28 }
 0x19a   : > { %v410_v30 = vmul.f32 %v409_v29, %v409_v29 }
 0x19c   : > { %v411_v31 = vsel %vm403_vm0, %v410_v30, 0.0 }
 0x19d   : > { %412 = vadd.xlane.f32.xlu0 %v411_v31 }
 0x22a   : > { %v413_v32 = vpop.xlane.xlu0 %412 }
 0x22b   : > { %v414_v33 = vmul.f32 0.03125, %v413_v32 }
 0x22d   : > { %v415_v34 = vadd.f32 1e-05, %v414_v33 }
 0x22f   : > { %617 = vrsqrt.f32 %v415_v34 }
 0x239   : > { %v618_v35 = vpop.eup %617 }
 0x23a   : > { %v417_v37 = vmul.f32 %v618_v35, %v409_v29 }
 0x23c   : > { %v424_v39 = vmul.f32 %v531_v36, %v417_v37 }
 0x23e   : > { %v431_v40 = vadd.f32 %v532_v38, %v424_v39 }
 0x240   : > { %432 = vst.msk [vmem:[%s217_s25] sm:$0xff] %vm403_vm0, %v431_v40 }
 0x241   : > { %632 = shalt.err (!%p629_p3)
}
 0x242   : > { %s633_s12 = scalar_lea.hbm %s831_s7, 128  ;;  %s637_s15 = scalar_lea.hbm %s879_s5, 256 }
 0x243   : > { %p634_p4 = scmp.ne.s32.totalorder %s831_s7, %s633_s12  ;;  %p638_p9 = scmp.lt.u32.totalorder %s831_s7, %s879_s5 }
 0x244   : > { %p639_p10 = scmp.lt.u32.totalorder %s637_s15, %s633_s12  ;;  %p641_p12 = scmp.lt.u32.totalorder %s633_s12, %s831_s7 }
 0x245   : > { %p635_p7 = pnand %p634_p4, %p752_p5 }
 0x246   : > { %p640_p11 = por %p639_p10, %p638_p9 }
 0x247   : > { %p636_p8 = pneg %p635_p7 }
 0x248   : > { %p642_p13 = por %p641_p12, %p640_p11 }
 0x24a   : > { %p643_p0 = pnand %p642_p13, %p636_p8 }
 0x24c   : > { %646 = shalt.err (!%p643_p0)
}
 0x24d   : > { %560 = dma.vmem_to_hbm [thread:$0]  (%p752_p5), %s833_s26, 128, %s831_s7, %s434_s8  }
 0x24e PF: > { %p566_p1 = scmp.ge.s32.totalorder %s681_s21, 2  ;;  %s459_s23 = sand.u32 1, %s669_s18  }
 0x24f   : > { %s460_s25 = scalar_lea.sflag [#allocation3], %s459_s23 }
 0x250   : > { %p563_p2 = pnand %p566_p1, %p756_p6 }
 0x252   : > { %664 = dma.done.wait (!%p563_p2), %s460_s25, 128  }
 0x253   : > { %666 = vsyncadd (!%p563_p2), %s460_s25, 4294967168  ;;  %p15_p3 = scmp.ge.s32.totalorder %s739_s24, 4   ;;  %s882_s18 = smov %s673_s19 }
 0x254   : > { %s883_s19 = smov %s677_s20  ;;  %s884_s20 = smov %s750_s27 }
 0x255   : > { %s885_s21 = smov %s739_s24  ;;  %17 = sbr.rel (!%p15_p3) target bundleno = 3 (0x3), region = 75 }
 0x25c   :  { %465 = vsyncpa [#allocation3], 1 }
 0x25d   :  { %467 = vsyncpa [#allocation3 + $0x1], 1 }

</bundles_post_ra>
